<compile_context>
chip_gen: v7x
topology: tpu7x:2x2x1
jax: 0.10.0
libtpu: 0.0.40
codegen_flags: <defaults>
</compile_context>

<pallas_src>
import jax
import jax.numpy as jnp
from jax import lax
from jax.experimental import pallas as pl
from jax.experimental.pallas import tpu as pltpu


def _round_up(v, m):
    return ((v + m - 1) // m) * m


# ---------------------------------------------------------------------------
# Fused GEMM kernel: out = epilogue(x @ w)
#   epilogue = optional per-channel affine (folded BatchNorm), optional
#              residual add and ReLU, all in the f32 accumulator.
# ---------------------------------------------------------------------------
def _make_gemm_kernel(has_affine, has_residual, relu):
    def kernel(*refs):
        r = 0
        x_ref = refs[r]; r += 1
        w_ref = refs[r]; r += 1
        if has_affine:
            scale_ref = refs[r]; r += 1
            shift_ref = refs[r]; r += 1
        if has_residual:
            res_ref = refs[r]; r += 1
        o_ref = refs[r]

        acc = jnp.dot(x_ref[...], w_ref[...],
                      preferred_element_type=jnp.float32)
        if has_affine:
            acc = acc * scale_ref[...] + shift_ref[...]
        if has_residual:
            acc = acc + res_ref[...].astype(jnp.float32)
        if relu:
            acc = jnp.maximum(acc, 0.0)
        o_ref[...] = acc.astype(o_ref.dtype)

    return kernel


def _pick_tile_m(M, K, N, in_bytes, out_bytes, res_bytes, tile_m):
    # At least two row tiles whenever possible so the "parallel" row axis can
    # shard across v7x's two TensorCores; 16-aligned for bf16 sublane packing.
    tm = max(16, min(tile_m, _round_up(pl.cdiv(M, 2), 16)))
    if tm >= M:
        return M                       # single block spanning the full row dim

    # Clamp so the double-buffered working set stays well inside VMEM
    # (v7x has 64 MiB physical; leave headroom for the resident weights).
    budget = 40 * 2 ** 20

    def est(t):
        return (2 * t * K * in_bytes + 2 * K * N * in_bytes
                + 2 * t * N * out_bytes + 2 * t * N * res_bytes + 4096)

    while tm > 32 and est(tm) > budget:
        tm = max(32, _round_up(tm // 2, 16))
    return tm


def fused_gemm(x, w, *, scale=None, shift=None, residual=None, relu=False,
               out_dtype=None, tile_m=1024):
    """epilogue(x @ w) with the row dim tiled over a 1-D 'parallel' grid.

    Weights (and the optional per-channel affine) use constant index_maps so
    they stay VMEM-resident across grid steps; activations / residual / output
    are double-buffered row tiles.  No wrapper-side padding: the trailing
    partial block may read past M, but those rows are never written back.
    """
    M, K = x.shape
    Kw, N = w.shape
    assert K == Kw
    assert (scale is None) == (shift is None)
    has_affine = scale is not None
    has_residual = residual is not None
    out_dtype = x.dtype if out_dtype is None else out_dtype

    in_b = jnp.dtype(x.dtype).itemsize
    out_b = jnp.dtype(out_dtype).itemsize
    res_b = jnp.dtype(residual.dtype).itemsize if has_residual else 0
    tm = _pick_tile_m(M, K, N, in_b, out_b, res_b, tile_m)
    grid_m = pl.cdiv(M, tm)

    args = [x, w.astype(x.dtype)]
    in_specs = [
        pl.BlockSpec((tm, K), lambda i: (i, 0)),     # activations: tiled rows
        pl.BlockSpec((K, N), lambda i: (0, 0)),      # weights: VMEM-resident
    ]
    if has_affine:
        args += [jnp.asarray(scale, jnp.float32).reshape(1, N),
                 jnp.asarray(shift, jnp.float32).reshape(1, N)]
        in_specs += [pl.BlockSpec((1, N), lambda i: (0, 0)),
                     pl.BlockSpec((1, N), lambda i: (0, 0))]
    if has_residual:
        args += [residual]                           # stays in its own dtype
        in_specs += [pl.BlockSpec((tm, N), lambda i: (i, 0))]

    vmem_est = (2 * tm * K * in_b + 2 * K * N * in_b + 2 * tm * N * out_b
                + 2 * tm * N * res_b + 4 * N * 4 * 2 + (1 << 16))
    vmem_limit = int(min(64 * 2 ** 20, max(32 * 2 ** 20, 2 * vmem_est)))

    return pl.pallas_call(
        _make_gemm_kernel(has_affine, has_residual, relu),
        out_shape=jax.ShapeDtypeStruct((M, N), out_dtype),
        grid=(grid_m,),
        in_specs=in_specs,
        out_specs=pl.BlockSpec((tm, N), lambda i: (i, 0)),
        compiler_params=pltpu.CompilerParams(
            dimension_semantics=("parallel",),       # shards across v7x's 2 TCs
            vmem_limit_bytes=vmem_limit),
    )(*args)


# ---------------------------------------------------------------------------
# MaxPool 3x3, stride 2, pad 1.
# TODO(synk): per the perf review this is a fused XLA 9-tap elementwise max
# (reads the input roughly once); the previous Pallas version materialized a
# 9x-duplicated tap tensor in HBM with <128-lane masked stores.
# ---------------------------------------------------------------------------
def maxpool_3x3_s2_p1(x_nhwc):
    n, h, w, c = x_nhwc.shape
    neg = float(jnp.finfo(x_nhwc.dtype).min)
    xp = jnp.pad(x_nhwc, ((0, 0), (1, 1), (1, 1), (0, 0)), constant_values=neg)
    ho = (h - 1) // 2 + 1
    wo = (w - 1) // 2 + 1
    out = None
    for kh in range(3):
        for kw in range(3):
            tap = xp[:, kh:kh + 2 * (ho - 1) + 1:2,
                        kw:kw + 2 * (wo - 1) + 1:2, :]
            out = tap if out is None else jnp.maximum(out, tap)
    return out


# ---------------------------------------------------------------------------
# Conv wrappers (layout-only work in the wrapper; MACs run in the GEMM kernel).
# ---------------------------------------------------------------------------
def _im2col_3x3(x_nhwc, stride):
    """9-tap patch extraction (pure layout, stays in x's compute dtype)
    -> (N*Ho*Wo, 9*Cin), HWIO tap order."""
    n, h, w, c = x_nhwc.shape
    xp = jnp.pad(x_nhwc, ((0, 0), (1, 1), (1, 1), (0, 0)))
    ho = (h - 1) // stride + 1
    wo = (w - 1) // stride + 1
    taps = []
    for kh in range(3):
        for kw in range(3):
            taps.append(xp[:, kh:kh + stride * (ho - 1) + 1:stride,
                              kw:kw + stride * (wo - 1) + 1:stride, :])
    cols = jnp.stack(taps, axis=3)               # (N, Ho, Wo, 9, Cin)
    return cols.reshape(n * ho * wo, 9 * c), ho, wo


def conv3x3(x_nhwc, w_hwio, *, stride):
    # TODO(synk): in-kernel 9-tap accumulation (K-tap 'arbitrary' grid axis
    # with shifted-window index maps) would avoid materializing im2col at all;
    # building it in bf16 (compute dtype) already halves its HBM traffic.
    n = x_nhwc.shape[0]
    cin, cout = w_hwio.shape[2], w_hwio.shape[3]
    cols, ho, wo = _im2col_3x3(x_nhwc, stride)
    out = fused_gemm(cols, w_hwio.reshape(9 * cin, cout))
    return out.reshape(n, ho, wo, cout)


def conv1x1(x_nhwc, w_io, *, scale=None, shift=None, residual=None,
            relu=False, out_dtype=None):
    n, h, w, c = x_nhwc.shape
    cout = w_io.shape[1]
    res = None if residual is None else residual.reshape(n * h * w, cout)
    out = fused_gemm(x_nhwc.reshape(n * h * w, c), w_io,
                     scale=scale, shift=shift, residual=res, relu=relu,
                     out_dtype=out_dtype)
    return out.reshape(n, h, w, cout)


# ---------------------------------------------------------------------------
# LargeBackBone forward
# ---------------------------------------------------------------------------
def large_backbone_forward(x_nchw, params, *, compute_dtype=jnp.bfloat16,
                           eps=1e-5):
    # NHWC, cast once up front: all inter-layer activations stay in
    # compute_dtype (bf16 by default -> half the inter-layer HBM traffic and
    # MXU-peak inputs); accumulation / epilogue in every kernel stay f32.
    x = jnp.transpose(x_nchw, (0, 2, 3, 1)).astype(compute_dtype)

    # BackBone.conv1 (double=True -> 3x3, stride 2, pad 1), then maxpool.
    x = conv3x3(x, params["conv1"], stride=2)
    x = maxpool_3x3_s2_p1(x)

    # BottleNecks (variant='d', stride=1, shortcut=False): relu(c + short).
    for blk in params["blocks"]:
        cmid = blk["branch2a"].shape[1]
        # branch2a and short both read x: one GEMM on concatenated weights
        # (lane-dense 3C-wide output, half the pallas_calls / x reads).
        w_as = jnp.concatenate([blk["branch2a"], blk["short"]], axis=1)
        a_short = conv1x1(x, w_as)
        a = a_short[..., :cmid]
        short = a_short[..., cmid:]                  # stays in compute dtype
        b = conv3x3(a, blk["branch2b"], stride=1)
        x = conv1x1(b, blk["branch2c"], residual=short, relu=True)

    # BackBone.conv2 (1x1) with LargeBackBone.norm (BatchNorm2d, eval running
    # stats) folded into the GEMM epilogue as a per-channel affine; f32 out.
    gamma, beta, mean, var = params["bn"]
    scale = gamma / jnp.sqrt(var + eps)
    shift = beta - mean * scale
    x = conv1x1(x, params["conv2"], scale=scale, shift=shift,
                out_dtype=jnp.float32)
    # TODO(synk): training-mode BatchNorm (per-batch statistics) is not
    # implemented; this matches nn.BatchNorm2d.eval() with the given stats.
    return jnp.transpose(x, (0, 3, 1, 2))            # NCHW


# ---------------------------------------------------------------------------
# Pure-JAX reference (same math, independent XLA path) and parameters.
# ---------------------------------------------------------------------------
def reference_forward(x_nchw, params, *, eps=1e-5):
    dn = ("NHWC", "HWIO", "NHWC")
    hi = lax.Precision.HIGHEST

    def conv(x, w_hwio, stride, pad):
        return lax.conv_general_dilated(
            x, w_hwio, (stride, stride), [(pad, pad), (pad, pad)],
            dimension_numbers=dn, precision=hi)

    x = jnp.transpose(x_nchw, (0, 2, 3, 1)).astype(jnp.float32)
    x = conv(x, params["conv1"], 2, 1)
    x = lax.reduce_window(x, -jnp.inf, lax.max, (1, 3, 3, 1), (1, 2, 2, 1),
                          [(0, 0), (1, 1), (1, 1), (0, 0)])
    for blk in params["blocks"]:
        a = conv(x, blk["branch2a"][None, None], 1, 0)
        b = conv(a, blk["branch2b"], 1, 1)
        c = conv(b, blk["branch2c"][None, None], 1, 0)
        s = conv(x, blk["short"][None, None], 1, 0)
        x = jnp.maximum(c + s, 0.0)
    x = conv(x, params["conv2"][None, None], 1, 0)
    gamma, beta, mean, var = params["bn"]
    x = (x - mean) / jnp.sqrt(var + eps) * gamma + beta
    return jnp.transpose(x, (0, 3, 1, 2))


def make_params(key, num_blocks, in_channels, hidden_channels, out_channels,
                expansion=2):
    keys = iter(jax.random.split(key, 4 * num_blocks + 6))

    def w(shape, fan_in):
        return jax.random.normal(next(keys), shape, jnp.float32) * fan_in ** -0.5

    params = {"conv1": w((3, 3, in_channels, hidden_channels), 9 * in_channels)}
    blocks = []
    prev = hidden_channels
    for i in range(1, num_blocks + 1):
        c = hidden_channels * i               # BottleNeck(hidden*i, hidden*i)
        assert c == prev, "channel chain must be runnable by the PyTorch module"
        blocks.append({
            "branch2a": w((c, c), c),
            "branch2b": w((3, 3, c, c), 9 * c),
            "branch2c": w((c, c * expansion), c),
            "short":    w((c, c * expansion), c),
        })
        prev = c * expansion
    params["blocks"] = blocks
    cin2 = hidden_channels * 2 ** num_blocks
    assert cin2 == prev
    params["conv2"] = w((cin2, out_channels), cin2)
    params["bn"] = (
        1.0 + 0.1 * jax.random.normal(next(keys), (out_channels,)),        # gamma
        0.1 * jax.random.normal(next(keys), (out_channels,)),              # beta
        0.1 * jax.random.normal(next(keys), (out_channels,)),              # run mean
        1.0 + 0.1 * jnp.abs(jax.random.normal(next(keys), (out_channels,))),  # var
    )
    return params


if __name__ == "__main__":
    # Small shapes consistent with the module (stride=1, shortcut=False,
    # expansion=2, variant='d' is the only config the PyTorch module can run).
    num_blocks, in_c, hidden_c, out_c = 2, 4, 8, 16
    batch, H, W = 2, 16, 16

    key = jax.random.PRNGKey(0)
    kx, kp = jax.random.split(key)
    x = jax.random.normal(kx, (batch, in_c, H, W), dtype=jnp.float32)
    params = make_params(kp, num_blocks, in_c, hidden_c, out_c)

    fwd = jax.jit(large_backbone_forward, static_argnames=("compute_dtype",))
    ref = jax.block_until_ready(reference_forward(x, params))

    # f32 compute path: strict correctness check.
    out_f32 = jax.block_until_ready(fwd(x, params, compute_dtype=jnp.float32))
    assert out_f32.shape == (batch, out_c, H // 4, W // 4), out_f32.shape
    assert jnp.allclose(out_f32, ref, atol=5e-2, rtol=5e-2), \
        float(jnp.max(jnp.abs(out_f32 - ref)))

    # Default bf16 compute path (v6e/v7x MXU peak, bf16 inter-layer
    # activations); accumulation/epilogue stay f32 -> loose tolerance.
    out_bf16 = jax.block_until_ready(fwd(x, params))
    assert out_bf16.dtype == jnp.float32
    assert jnp.allclose(out_bf16, ref, atol=3e-1, rtol=3e-1), \
        float(jnp.max(jnp.abs(out_bf16 - ref)))

    print("KERNEL_OK")
</pallas_src>

<mosaic_0001>
module attributes {stable_mosaic.version = 11 : i64} {
  func.func @kernel(%arg0: i32, %arg1: memref<64x36xf32, #tpu.memory_space<vmem>>, %arg2: memref<36x8xf32, #tpu.memory_space<vmem>>, %arg3: memref<64x8xf32, #tpu.memory_space<vmem>>) attributes {dimension_semantics = [#tpu.dimension_semantics<parallel>], iteration_bounds = array<i64: 2>, scalar_prefetch = 0 : i64, scratch_operands = 0 : i64, tpu.core_type = #tpu.core_type<tc>, window_params = [{transform_indices = @transform_0, window_bounds = array<i64: 64, 36>}, {pipeline_mode = #tpu.pipeline_mode<synchronous>, transform_indices = @transform_1, window_bounds = array<i64: 36, 8>}, {transform_indices = @transform_2, window_bounds = array<i64: 64, 8>}]} {
    %c0 = arith.constant 0 : index
    %c0_0 = arith.constant 0 : index
    %0 = vector.load %arg1[%c0, %c0_0] : memref<64x36xf32, #tpu.memory_space<vmem>>, vector<64x36xf32>
    %c0_1 = arith.constant 0 : index
    %c0_2 = arith.constant 0 : index
    %1 = vector.load %arg2[%c0_1, %c0_2] : memref<36x8xf32, #tpu.memory_space<vmem>>, vector<36x8xf32>
    %cst = arith.constant dense<0.000000e+00> : vector<64x8xf32>
    %2 = tpu.matmul %0, %1, %cst {dimension_numbers = #tpu.dot_dimension_numbers<[1], [0], [0], [1], [0, 0, 1, 1], [], []>} : vector<64x36xf32>, vector<36x8xf32>, vector<64x8xf32> -> vector<64x8xf32>
    %c0_3 = arith.constant 0 : index
    %c0_4 = arith.constant 0 : index
    %3 = vector.load %arg3[%c0_3, %c0_4] : memref<64x8xf32, #tpu.memory_space<vmem>>, vector<64x8xf32>
    tpu.vector_store %arg3[%c0_3, %c0_4], %2 {strides = array<i32>} : memref<64x8xf32, #tpu.memory_space<vmem>>, vector<64x8xf32>,
    return
  }
  func.func @transform_0(%arg0: i32) -> (i32, i32) {
    %c0_i32 = arith.constant 0 : i32
    %c0_i32_0 = arith.constant 0 : i32
    return %arg0, %c0_i32 : i32, i32
  }
  func.func @transform_1(%arg0: i32) -> (i32, i32) {
    %c0_i32 = arith.constant 0 : i32
    %c0_i32_0 = arith.constant 0 : i32
    %c0_i32_1 = arith.constant 0 : i32
    return %c0_i32, %c0_i32_0 : i32, i32
  }
  func.func @transform_2(%arg0: i32) -> (i32, i32) {
    %c0_i32 = arith.constant 0 : i32
    %c0_i32_0 = arith.constant 0 : i32
    return %arg0, %c0_i32 : i32, i32
  }
}

module attributes {stable_mosaic.version = 11 : i64} {
  func.func @kernel(%arg0: i32, %arg1: memref<16x8xf32, #tpu.memory_space<vmem>>, %arg2: memref<8x24xf32, #tpu.memory_space<vmem>>, %arg3: memref<16x24xf32, #tpu.memory_space<vmem>>) attributes {dimension_semantics = [#tpu.dimension_semantics<parallel>], iteration_bounds = array<i64: 2>, scalar_prefetch = 0 : i64, scratch_operands = 0 : i64, tpu.core_type = #tpu.core_type<tc>, window_params = [{transform_indices = @transform_0, window_bounds = array<i64: 16, 8>}, {pipeline_mode = #tpu.pipeline_mode<synchronous>, transform_indices = @transform_1, window_bounds = array<i64: 8, 24>}, {transform_indices = @transform_2, window_bounds = array<i64: 16, 24>}]} {
    %c0 = arith.constant 0 : index
    %c0_0 = arith.constant 0 : index
    %0 = vector.load %arg1[%c0, %c0_0] : memref<16x8xf32, #tpu.memory_space<vmem>>, vector<16x8xf32>
    %c0_1 = arith.constant 0 : index
    %c0_2 = arith.constant 0 : index
    %1 = vector.load %arg2[%c0_1, %c0_2] : memref<8x24xf32, #tpu.memory_space<vmem>>, vector<8x24xf32>
    %cst = arith.constant dense<0.000000e+00> : vector<16x24xf32>
    %2 = tpu.matmul %0, %1, %cst {dimension_numbers = #tpu.dot_dimension_numbers<[1], [0], [0], [1], [0, 0, 1, 1], [], []>} : vector<16x8xf32>, vector<8x24xf32>, vector<16x24xf32> -> vector<16x24xf32>
    %c0_3 = arith.constant 0 : index
    %c0_4 = arith.constant 0 : index
    %3 = vector.load %arg3[%c0_3, %c0_4] : memref<16x24xf32, #tpu.memory_space<vmem>>, vector<16x24xf32>
    tpu.vector_store %arg3[%c0_3, %c0_4], %2 {strides = array<i32>} : memref<16x24xf32, #tpu.memory_space<vmem>>, vector<16x24xf32>,
    return
  }
  func.func @transform_0(%arg0: i32) -> (i32, i32) {
    %c0_i32 = arith.constant 0 : i32
    %c0_i32_0 = arith.constant 0 : i32
    return %arg0, %c0_i32 : i32, i32
  }
  func.func @transform_1(%arg0: i32) -> (i32, i32) {
    %c0_i32 = arith.constant 0 : i32
    %c0_i32_0 = arith.constant 0 : i32
    %c0_i32_1 = arith.constant 0 : i32
    return %c0_i32, %c0_i32_0 : i32, i32
  }
  func.func @transform_2(%arg0: i32) -> (i32, i32) {
    %c0_i32 = arith.constant 0 : i32
    %c0_i32_0 = arith.constant 0 : i32
    return %arg0, %c0_i32 : i32, i32
  }
}

module attributes {stable_mosaic.version = 11 : i64} {
  func.func @kernel(%arg0: i32, %arg1: memref<16x72xf32, #tpu.memory_space<vmem>>, %arg2: memref<72x8xf32, #tpu.memory_space<vmem>>, %arg3: memref<16x8xf32, #tpu.memory_space<vmem>>) attributes {dimension_semantics = [#tpu.dimension_semantics<parallel>], iteration_bounds = array<i64: 2>, scalar_prefetch = 0 : i64, scratch_operands = 0 : i64, tpu.core_type = #tpu.core_type<tc>, window_params = [{transform_indices = @transform_0, window_bounds = array<i64: 16, 72>}, {pipeline_mode = #tpu.pipeline_mode<synchronous>, transform_indices = @transform_1, window_bounds = array<i64: 72, 8>}, {transform_indices = @transform_2, window_bounds = array<i64: 16, 8>}]} {
    %c0 = arith.constant 0 : index
    %c0_0 = arith.constant 0 : index
    %0 = vector.load %arg1[%c0, %c0_0] : memref<16x72xf32, #tpu.memory_space<vmem>>, vector<16x72xf32>
    %c0_1 = arith.constant 0 : index
    %c0_2 = arith.constant 0 : index
    %1 = vector.load %arg2[%c0_1, %c0_2] : memref<72x8xf32, #tpu.memory_space<vmem>>, vector<72x8xf32>
    %cst = arith.constant dense<0.000000e+00> : vector<16x8xf32>
    %2 = tpu.matmul %0, %1, %cst {dimension_numbers = #tpu.dot_dimension_numbers<[1], [0], [0], [1], [0, 0, 1, 1], [], []>} : vector<16x72xf32>, vector<72x8xf32>, vector<16x8xf32> -> vector<16x8xf32>
    %c0_3 = arith.constant 0 : index
    %c0_4 = arith.constant 0 : index
    %3 = vector.load %arg3[%c0_3, %c0_4] : memref<16x8xf32, #tpu.memory_space<vmem>>, vector<16x8xf32>
    tpu.vector_store %arg3[%c0_3, %c0_4], %2 {strides = array<i32>} : memref<16x8xf32, #tpu.memory_space<vmem>>, vector<16x8xf32>,
    return
  }
  func.func @transform_0(%arg0: i32) -> (i32, i32) {
    %c0_i32 = arith.constant 0 : i32
    %c0_i32_0 = arith.constant 0 : i32
    return %arg0, %c0_i32 : i32, i32
  }
  func.func @transform_1(%arg0: i32) -> (i32, i32) {
    %c0_i32 = arith.constant 0 : i32
    %c0_i32_0 = arith.constant 0 : i32
    %c0_i32_1 = arith.constant 0 : i32
    return %c0_i32, %c0_i32_0 : i32, i32
  }
  func.func @transform_2(%arg0: i32) -> (i32, i32) {
    %c0_i32 = arith.constant 0 : i32
    %c0_i32_0 = arith.constant 0 : i32
    return %arg0, %c0_i32 : i32, i32
  }
}

module attributes {stable_mosaic.version = 11 : i64} {
  func.func @kernel(%arg0: i32, %arg1: memref<16x8xf32, #tpu.memory_space<vmem>>, %arg2: memref<8x16xf32, #tpu.memory_space<vmem>>, %arg3: memref<16x16xf32, #tpu.memory_space<vmem>>, %arg4: memref<16x16xf32, #tpu.memory_space<vmem>>) attributes {dimension_semantics = [#tpu.dimension_semantics<parallel>], iteration_bounds = array<i64: 2>, scalar_prefetch = 0 : i64, scratch_operands = 0 : i64, tpu.core_type = #tpu.core_type<tc>, window_params = [{transform_indices = @transform_0, window_bounds = array<i64: 16, 8>}, {pipeline_mode = #tpu.pipeline_mode<synchronous>, transform_indices = @transform_1, window_bounds = array<i64: 8, 16>}, {transform_indices = @transform_2, window_bounds = array<i64: 16, 16>}, {transform_indices = @transform_3, window_bounds = array<i64: 16, 16>}]} {
    %c0 = arith.constant 0 : index
    %c0_0 = arith.constant 0 : index
    %0 = vector.load %arg1[%c0, %c0_0] : memref<16x8xf32, #tpu.memory_space<vmem>>, vector<16x8xf32>
    %c0_1 = arith.constant 0 : index
    %c0_2 = arith.constant 0 : index
    %1 = vector.load %arg2[%c0_1, %c0_2] : memref<8x16xf32, #tpu.memory_space<vmem>>, vector<8x16xf32>
    %cst = arith.constant dense<0.000000e+00> : vector<16x16xf32>
    %2 = tpu.matmul %0, %1, %cst {dimension_numbers = #tpu.dot_dimension_numbers<[1], [0], [0], [1], [0, 0, 1, 1], [], []>} : vector<16x8xf32>, vector<8x16xf32>, vector<16x16xf32> -> vector<16x16xf32>
    %c0_3 = arith.constant 0 : index
    %c0_4 = arith.constant 0 : index
    %3 = vector.load %arg3[%c0_3, %c0_4] : memref<16x16xf32, #tpu.memory_space<vmem>>, vector<16x16xf32>
    %4 = arith.addf %2, %3 : vector<16x16xf32>
    %cst_5 = arith.constant 0.000000e+00 : f32
    %5 = vector.broadcast %cst_5 : f32 to vector<16x16xf32>
    %6 = arith.maximumf %4, %5 : vector<16x16xf32>
    %c0_6 = arith.constant 0 : index
    %c0_7 = arith.constant 0 : index
    %7 = vector.load %arg4[%c0_6, %c0_7] : memref<16x16xf32, #tpu.memory_space<vmem>>, vector<16x16xf32>
    tpu.vector_store %arg4[%c0_6, %c0_7], %6 {strides = array<i32>} : memref<16x16xf32, #tpu.memory_space<vmem>>, vector<16x16xf32>,
    return
  }
  func.func @transform_0(%arg0: i32) -> (i32, i32) {
    %c0_i32 = arith.constant 0 : i32
    %c0_i32_0 = arith.constant 0 : i32
    return %arg0, %c0_i32 : i32, i32
  }
  func.func @transform_1(%arg0: i32) -> (i32, i32) {
    %c0_i32 = arith.constant 0 : i32
    %c0_i32_0 = arith.constant 0 : i32
    %c0_i32_1 = arith.constant 0 : i32
    return %c0_i32, %c0_i32_0 : i32, i32
  }
  func.func @transform_2(%arg0: i32) -> (i32, i32) {
    %c0_i32 = arith.constant 0 : i32
    %c0_i32_0 = arith.constant 0 : i32
    return %arg0, %c0_i32 : i32, i32
  }
  func.func @transform_3(%arg0: i32) -> (i32, i32) {
    %c0_i32 = arith.constant 0 : i32
    %c0_i32_0 = arith.constant 0 : i32
    return %arg0, %c0_i32 : i32, i32
  }
}

module attributes {stable_mosaic.version = 11 : i64} {
  func.func @kernel(%arg0: i32, %arg1: memref<16x16xf32, #tpu.memory_space<vmem>>, %arg2: memref<16x48xf32, #tpu.memory_space<vmem>>, %arg3: memref<16x48xf32, #tpu.memory_space<vmem>>) attributes {dimension_semantics = [#tpu.dimension_semantics<parallel>], iteration_bounds = array<i64: 2>, scalar_prefetch = 0 : i64, scratch_operands = 0 : i64, tpu.core_type = #tpu.core_type<tc>, window_params = [{transform_indices = @transform_0, window_bounds = array<i64: 16, 16>}, {pipeline_mode = #tpu.pipeline_mode<synchronous>, transform_indices = @transform_1, window_bounds = array<i64: 16, 48>}, {transform_indices = @transform_2, window_bounds = array<i64: 16, 48>}]} {
    %c0 = arith.constant 0 : index
    %c0_0 = arith.constant 0 : index
    %0 = vector.load %arg1[%c0, %c0_0] : memref<16x16xf32, #tpu.memory_space<vmem>>, vector<16x16xf32>
    %c0_1 = arith.constant 0 : index
    %c0_2 = arith.constant 0 : index
    %1 = vector.load %arg2[%c0_1, %c0_2] : memref<16x48xf32, #tpu.memory_space<vmem>>, vector<16x48xf32>
    %cst = arith.constant dense<0.000000e+00> : vector<16x48xf32>
    %2 = tpu.matmul %0, %1, %cst {dimension_numbers = #tpu.dot_dimension_numbers<[1], [0], [0], [1], [0, 0, 1, 1], [], []>} : vector<16x16xf32>, vector<16x48xf32>, vector<16x48xf32> -> vector<16x48xf32>
    %c0_3 = arith.constant 0 : index
    %c0_4 = arith.constant 0 : index
    %3 = vector.load %arg3[%c0_3, %c0_4] : memref<16x48xf32, #tpu.memory_space<vmem>>, vector<16x48xf32>
    tpu.vector_store %arg3[%c0_3, %c0_4], %2 {strides = array<i32>} : memref<16x48xf32, #tpu.memory_space<vmem>>, vector<16x48xf32>,
    return
  }
  func.func @transform_0(%arg0: i32) -> (i32, i32) {
    %c0_i32 = arith.constant 0 : i32
    %c0_i32_0 = arith.constant 0 : i32
    return %arg0, %c0_i32 : i32, i32
  }
  func.func @transform_1(%arg0: i32) -> (i32, i32) {
    %c0_i32 = arith.constant 0 : i32
    %c0_i32_0 = arith.constant 0 : i32
    %c0_i32_1 = arith.constant 0 : i32
    return %c0_i32, %c0_i32_0 : i32, i32
  }
  func.func @transform_2(%arg0: i32) -> (i32, i32) {
    %c0_i32 = arith.constant 0 : i32
    %c0_i32_0 = arith.constant 0 : i32
    return %arg0, %c0_i32 : i32, i32
  }
}

module attributes {stable_mosaic.version = 11 : i64} {
  func.func @kernel(%arg0: i32, %arg1: memref<16x144xf32, #tpu.memory_space<vmem>>, %arg2: memref<144x16xf32, #tpu.memory_space<vmem>>, %arg3: memref<16x16xf32, #tpu.memory_space<vmem>>) attributes {dimension_semantics = [#tpu.dimension_semantics<parallel>], iteration_bounds = array<i64: 2>, scalar_prefetch = 0 : i64, scratch_operands = 0 : i64, tpu.core_type = #tpu.core_type<tc>, window_params = [{transform_indices = @transform_0, window_bounds = array<i64: 16, 144>}, {pipeline_mode = #tpu.pipeline_mode<synchronous>, transform_indices = @transform_1, window_bounds = array<i64: 144, 16>}, {transform_indices = @transform_2, window_bounds = array<i64: 16, 16>}]} {
    %c0 = arith.constant 0 : index
    %c0_0 = arith.constant 0 : index
    %0 = vector.load %arg1[%c0, %c0_0] : memref<16x144xf32, #tpu.memory_space<vmem>>, vector<16x144xf32>
    %c0_1 = arith.constant 0 : index
    %c0_2 = arith.constant 0 : index
    %1 = vector.load %arg2[%c0_1, %c0_2] : memref<144x16xf32, #tpu.memory_space<vmem>>, vector<144x16xf32>
    %cst = arith.constant dense<0.000000e+00> : vector<16x16xf32>
    %2 = tpu.matmul %0, %1, %cst {dimension_numbers = #tpu.dot_dimension_numbers<[1], [0], [0], [1], [0, 0, 1, 1], [], []>} : vector<16x144xf32>, vector<144x16xf32>, vector<16x16xf32> -> vector<16x16xf32>
    %c0_3 = arith.constant 0 : index
    %c0_4 = arith.constant 0 : index
    %3 = vector.load %arg3[%c0_3, %c0_4] : memref<16x16xf32, #tpu.memory_space<vmem>>, vector<16x16xf32>
    tpu.vector_store %arg3[%c0_3, %c0_4], %2 {strides = array<i32>} : memref<16x16xf32, #tpu.memory_space<vmem>>, vector<16x16xf32>,
    return
  }
  func.func @transform_0(%arg0: i32) -> (i32, i32) {
    %c0_i32 = arith.constant 0 : i32
    %c0_i32_0 = arith.constant 0 : i32
    return %arg0, %c0_i32 : i32, i32
  }
  func.func @transform_1(%arg0: i32) -> (i32, i32) {
    %c0_i32 = arith.constant 0 : i32
    %c0_i32_0 = arith.constant 0 : i32
    %c0_i32_1 = arith.constant 0 : i32
    return %c0_i32, %c0_i32_0 : i32, i32
  }
  func.func @transform_2(%arg0: i32) -> (i32, i32) {
    %c0_i32 = arith.constant 0 : i32
    %c0_i32_0 = arith.constant 0 : i32
    return %arg0, %c0_i32 : i32, i32
  }
}

module attributes {stable_mosaic.version = 11 : i64} {
  func.func @kernel(%arg0: i32, %arg1: memref<16x16xf32, #tpu.memory_space<vmem>>, %arg2: memref<16x32xf32, #tpu.memory_space<vmem>>, %arg3: memref<16x32xf32, #tpu.memory_space<vmem>>, %arg4: memref<16x32xf32, #tpu.memory_space<vmem>>) attributes {dimension_semantics = [#tpu.dimension_semantics<parallel>], iteration_bounds = array<i64: 2>, scalar_prefetch = 0 : i64, scratch_operands = 0 : i64, tpu.core_type = #tpu.core_type<tc>, window_params = [{transform_indices = @transform_0, window_bounds = array<i64: 16, 16>}, {pipeline_mode = #tpu.pipeline_mode<synchronous>, transform_indices = @transform_1, window_bounds = array<i64: 16, 32>}, {transform_indices = @transform_2, window_bounds = array<i64: 16, 32>}, {transform_indices = @transform_3, window_bounds = array<i64: 16, 32>}]} {
    %c0 = arith.constant 0 : index
    %c0_0 = arith.constant 0 : index
    %0 = vector.load %arg1[%c0, %c0_0] : memref<16x16xf32, #tpu.memory_space<vmem>>, vector<16x16xf32>
    %c0_1 = arith.constant 0 : index
    %c0_2 = arith.constant 0 : index
    %1 = vector.load %arg2[%c0_1, %c0_2] : memref<16x32xf32, #tpu.memory_space<vmem>>, vector<16x32xf32>
    %cst = arith.constant dense<0.000000e+00> : vector<16x32xf32>
    %2 = tpu.matmul %0, %1, %cst {dimension_numbers = #tpu.dot_dimension_numbers<[1], [0], [0], [1], [0, 0, 1, 1], [], []>} : vector<16x16xf32>, vector<16x32xf32>, vector<16x32xf32> -> vector<16x32xf32>
    %c0_3 = arith.constant 0 : index
    %c0_4 = arith.constant 0 : index
    %3 = vector.load %arg3[%c0_3, %c0_4] : memref<16x32xf32, #tpu.memory_space<vmem>>, vector<16x32xf32>
    %4 = arith.addf %2, %3 : vector<16x32xf32>
    %cst_5 = arith.constant 0.000000e+00 : f32
    %5 = vector.broadcast %cst_5 : f32 to vector<16x32xf32>
    %6 = arith.maximumf %4, %5 : vector<16x32xf32>
    %c0_6 = arith.constant 0 : index
    %c0_7 = arith.constant 0 : index
    %7 = vector.load %arg4[%c0_6, %c0_7] : memref<16x32xf32, #tpu.memory_space<vmem>>, vector<16x32xf32>
    tpu.vector_store %arg4[%c0_6, %c0_7], %6 {strides = array<i32>} : memref<16x32xf32, #tpu.memory_space<vmem>>, vector<16x32xf32>,
    return
  }
  func.func @transform_0(%arg0: i32) -> (i32, i32) {
    %c0_i32 = arith.constant 0 : i32
    %c0_i32_0 = arith.constant 0 : i32
    return %arg0, %c0_i32 : i32, i32
  }
  func.func @transform_1(%arg0: i32) -> (i32, i32) {
    %c0_i32 = arith.constant 0 : i32
    %c0_i32_0 = arith.constant 0 : i32
    %c0_i32_1 = arith.constant 0 : i32
    return %c0_i32, %c0_i32_0 : i32, i32
  }
  func.func @transform_2(%arg0: i32) -> (i32, i32) {
    %c0_i32 = arith.constant 0 : i32
    %c0_i32_0 = arith.constant 0 : i32
    return %arg0, %c0_i32 : i32, i32
  }
  func.func @transform_3(%arg0: i32) -> (i32, i32) {
    %c0_i32 = arith.constant 0 : i32
    %c0_i32_0 = arith.constant 0 : i32
    return %arg0, %c0_i32 : i32, i32
  }
}

module attributes {stable_mosaic.version = 11 : i64} {
  func.func @kernel(%arg0: i32, %arg1: memref<16x32xf32, #tpu.memory_space<vmem>>, %arg2: memref<32x16xf32, #tpu.memory_space<vmem>>, %arg3: memref<1x16xf32, #tpu.memory_space<vmem>>, %arg4: memref<1x16xf32, #tpu.memory_space<vmem>>, %arg5: memref<16x16xf32, #tpu.memory_space<vmem>>) attributes {dimension_semantics = [#tpu.dimension_semantics<parallel>], iteration_bounds = array<i64: 2>, scalar_prefetch = 0 : i64, scratch_operands = 0 : i64, tpu.core_type = #tpu.core_type<tc>, window_params = [{transform_indices = @transform_0, window_bounds = array<i64: 16, 32>}, {pipeline_mode = #tpu.pipeline_mode<synchronous>, transform_indices = @transform_1, window_bounds = array<i64: 32, 16>}, {pipeline_mode = #tpu.pipeline_mode<synchronous>, transform_indices = @transform_2, window_bounds = array<i64: 1, 16>}, {pipeline_mode = #tpu.pipeline_mode<synchronous>, transform_indices = @transform_3, window_bounds = array<i64: 1, 16>}, {transform_indices = @transform_4, window_bounds = array<i64: 16, 16>}]} {
    %c0 = arith.constant 0 : index
    %c0_0 = arith.constant 0 : index
    %0 = vector.load %arg1[%c0, %c0_0] : memref<16x32xf32, #tpu.memory_space<vmem>>, vector<16x32xf32>
    %c0_1 = arith.constant 0 : index
    %c0_2 = arith.constant 0 : index
    %1 = vector.load %arg2[%c0_1, %c0_2] : memref<32x16xf32, #tpu.memory_space<vmem>>, vector<32x16xf32>
    %cst = arith.constant dense<0.000000e+00> : vector<16x16xf32>
    %2 = tpu.matmul %0, %1, %cst {dimension_numbers = #tpu.dot_dimension_numbers<[1], [0], [0], [1], [0, 0, 1, 1], [], []>} : vector<16x32xf32>, vector<32x16xf32>, vector<16x16xf32> -> vector<16x16xf32>
    %c0_3 = arith.constant 0 : index
    %c0_4 = arith.constant 0 : index
    %3 = vector.load %arg3[%c0_3, %c0_4] : memref<1x16xf32, #tpu.memory_space<vmem>>, vector<1x16xf32>
    %4 = vector.broadcast %3 : vector<1x16xf32> to vector<16x16xf32>
    %5 = arith.mulf %2, %4 : vector<16x16xf32>
    %c0_5 = arith.constant 0 : index
    %c0_6 = arith.constant 0 : index
    %6 = vector.load %arg4[%c0_5, %c0_6] : memref<1x16xf32, #tpu.memory_space<vmem>>, vector<1x16xf32>
    %7 = vector.broadcast %6 : vector<1x16xf32> to vector<16x16xf32>
    %8 = arith.addf %5, %7 : vector<16x16xf32>
    %c0_7 = arith.constant 0 : index
    %c0_8 = arith.constant 0 : index
    %9 = vector.load %arg5[%c0_7, %c0_8] : memref<16x16xf32, #tpu.memory_space<vmem>>, vector<16x16xf32>
    tpu.vector_store %arg5[%c0_7, %c0_8], %8 {strides = array<i32>} : memref<16x16xf32, #tpu.memory_space<vmem>>, vector<16x16xf32>,
    return
  }
  func.func @transform_0(%arg0: i32) -> (i32, i32) {
    %c0_i32 = arith.constant 0 : i32
    %c0_i32_0 = arith.constant 0 : i32
    return %arg0, %c0_i32 : i32, i32
  }
  func.func @transform_1(%arg0: i32) -> (i32, i32) {
    %c0_i32 = arith.constant 0 : i32
    %c0_i32_0 = arith.constant 0 : i32
    %c0_i32_1 = arith.constant 0 : i32
    return %c0_i32, %c0_i32_0 : i32, i32
  }
  func.func @transform_2(%arg0: i32) -> (i32, i32) {
    %c0_i32 = arith.constant 0 : i32
    %c0_i32_0 = arith.constant 0 : i32
    %c0_i32_1 = arith.constant 0 : i32
    return %c0_i32, %c0_i32_0 : i32, i32
  }
  func.func @transform_3(%arg0: i32) -> (i32, i32) {
    %c0_i32 = arith.constant 0 : i32
    %c0_i32_0 = arith.constant 0 : i32
    %c0_i32_1 = arith.constant 0 : i32
    return %c0_i32, %c0_i32_0 : i32, i32
  }
  func.func @transform_4(%arg0: i32) -> (i32, i32) {
    %c0_i32 = arith.constant 0 : i32
    %c0_i32_0 = arith.constant 0 : i32
    return %arg0, %c0_i32 : i32, i32
  }
}

</mosaic_0001>

<bundles_post_ra>
// kernel: large_backbone_forward.8
= control target key start
LH: loop header
LB: loop body
LE: loop exit
PB: predicated region body
PF: predicated region fallthrough
CT: control target
= control target key end

     0   :  { %s459_s9 = smov 0   ;;  %s514_s0 = inlined_call_operand.vmem [shape: f32[128,36], index: 0, kind: input, shape index: {}]   ;;  %s515_s1 = inlined_call_operand.vmem [shape: f32[36,8], index: 1, kind: input, shape index: {}]   ;;  %s516_s2 = inlined_call_operand.vmem [shape: f32[128,8], index: 2, kind: output, shape index: {}]  }
   0x1 LB: > { %s359_s10 = sadd.s32 4294967295, %s442_s9   ;;  %p363_p0 = scmp.ge.s32.totalorder %s442_s9, 1  ;;  %s442_s9 = sphi %s459_s9, %s12_s9  }
   0x2   : > { %p113_p1 = scmp.lt.s32.totalorder %s442_s9, 3 }
   0x4   : > { %p114_p2 = pnand %p363_p0, %p113_p1 }
   0x5   : > { %v155_v0 = vld [vmem:[%s515_s1] sm:$0xff] (!%p114_p2)  ;;  %v156_v1 = vld [vmem:[%s515_s1 + $0x8] sm:$0xff] (!%p114_p2)  ;;  %v157_v2 = vld [vmem:[%s515_s1 + $0x10] sm:$0xff] (!%p114_p2)  ;;  %s364_s17 = sshll.u32 (!%p114_p2), %s359_s10, 3  ;;  %vm185_vm0 = vcmask (!%p114_p2), 1043456   ;;  %vm160_vm1 = vcmask (!%p114_p2), 293888  }
   0x6   : > { %117 = sbr.rel (%p114_p2) target bundleno = 237 (0xed), region = 28  ;;  %v414_v3 = vpack.c.bf16 (!%p114_p2), %v156_v1, %v155_v0  ;;  %v158_v4 = vld [vmem:[%s515_s1 + $0x18] sm:$0xff] (!%p114_p2)  ;;  %p136_p3 = scmp.lt.s32.totalorder (!%p114_p2), %s364_s17, 15  ;;  %v159_v6 = vld [vmem:[%s515_s1 + $0x20] sm:$0xf] (!%p114_p2)  ;;  %vm294_vm2 = vcmask (!%p114_p2), 64512  }
   0x7   : > { %v418_v5 = vpack.c.bf16 (!%p114_p2), %v158_v4, %v157_v2 }
   0x8   : > { %415 = vmatprep.subr.bf16.mxu0 (!%p114_p2), %v414_v3  ;;  %422 = vmatprep.subr.bf16.mxu1 (!%p114_p2), %v414_v3 }
   0x9   : > { %417 = vmatpush3.bf16.msra.mxu0 (!%p114_p2), %v414_v3  ;;  %425 = vmatpush3.bf16.msra.mxu1 (!%p114_p2), %v414_v3 }
   0xa   : > { %419 = vmatprep.subr.bf16.mxu0 (!%p114_p2), %v418_v5  ;;  %423 = vmatprep.subr.bf16.mxu1 (!%p114_p2), %v418_v5 }
   0xd   : > { %s518_s17 = smov (!%p136_p3, %s364_s17), 15  ;;  %421 = vmatpush3.bf16.msra.mxu0 %v418_v5  ;;  %426 = vmatpush3.bf16.msra.mxu1 %v418_v5 }
   0xe   : > { %s365_s20 = sshll.u32 %s518_s17, 3  ;;  %400 = vmatprep.subr.msk.mxu0 %vm185_vm0, %v159_v6  ;;  %424 = vmatprep.subr.msk.mxu1 %vm185_vm0, %v159_v6 }
   0xf   : > { %s139_s25 = scalar_lea.vmem %s514_s0, %s365_s20  ;;  %s145_s28 = scalar_lea.vmem %s516_s2, %s365_s20 }
  0x10   : > { %v147_v7 = vld [vmem:[%s139_s25] sm:$0xff]  ;;  %v148_v9 = vld [vmem:[%s139_s25 + $0x8] sm:$0xff]  ;;  %v149_v11 = vld [vmem:[%s139_s25 + $0x10] sm:$0xff] }
  0x11   : > { %v151_v8 = vld [vmem:[%s139_s25 + $0x20] sm:$0xff]  ;;  %402 = vmatprep.mubr.msk.f32.mxu0 %vm160_vm1, %v147_v7  ;;  %v152_v10 = vld [vmem:[%s139_s25 + $0x28] sm:$0xff]  ;;  %v153_v12 = vld [vmem:[%s139_s25 + $0x30] sm:$0xff]  ;;  %401 = vmatpush3.msk.msra.mxu0 %vm185_vm0, %v159_v6 }
  0x12   : > { %408 = vmatprep.mubr.msk.f32.mxu1 %vm160_vm1, %v151_v8  ;;  %427 = vmatpush3.msk.msra.mxu1 %vm185_vm0, %v159_v6  ;;  %v150_v13 = vld [vmem:[%s139_s25 + $0x18] sm:$0xff] }
  0x13   : > { %403 = vmatmul.mubr.msk.f32.vlgmr.msra.gmra.mrb[0].mxu0 %vm160_vm1, %v148_v9  ;;  %409 = vmatmul.mubr.msk.f32.vlgmr.msra.gmra.mrb[0].mxu1 %vm160_vm1, %v152_v10  ;;  %v154_v14 = vld [vmem:[%s139_s25 + $0x38] sm:$0xff] }
  0x14   : > { %405 = vmatprep.mubr.msk.f32.mxu0 %vm160_vm1, %v149_v11  ;;  %411 = vmatprep.mubr.msk.f32.mxu1 %vm160_vm1, %v153_v12 }
  0x17   : > { %406 = vmatmul.mubr.msk.f32.gmra.mrb[2].mxu0 %vm160_vm1, %v150_v13  ;;  %412 = vmatmul.mubr.msk.f32.gmra.mrb[2].mxu1 %vm160_vm1, %v154_v14 }
  0xe6   : > { %v404_v15 = vpop.f32.mrb[0].mxu0  ;;  %v410_v16 = vpop.f32.mrb[0].mxu1 }
  0xe7   : > { %296 = vst.msk [vmem:[%s145_s28 + $0x8] sm:$0xff] %vm294_vm2, %v404_v15  ;;  %300 = vst.msk [vmem:[%s145_s28 + $0x28] sm:$0xff] %vm294_vm2, %v410_v16  ;;  %v255_v17 = vpop.f32.mrb[1].mxu0  ;;  %v275_v18 = vpop.f32.mrb[1].mxu1 }
  0xe8   : > { %295 = vst.msk [vmem:[%s145_s28] sm:$0xff] %vm294_vm2, %v255_v17  ;;  %299 = vst.msk [vmem:[%s145_s28 + $0x20] sm:$0xff] %vm294_vm2, %v275_v18 }
  0xea   : > { %v407_v19 = vpop.f32.mrb[2].mxu0  ;;  %v413_v20 = vpop.f32.mrb[2].mxu1 }
  0xeb   : > { %298 = vst.msk [vmem:[%s145_s28 + $0x18] sm:$0xff] %vm294_vm2, %v407_v19  ;;  %302 = vst.msk [vmem:[%s145_s28 + $0x38] sm:$0xff] %vm294_vm2, %v413_v20  ;;  %v265_v21 = vpop.f32.mrb[3].mxu0  ;;  %v285_v22 = vpop.f32.mrb[3].mxu1 }
  0xec   : > { %297 = vst.msk [vmem:[%s145_s28 + $0x10] sm:$0xff] %vm294_vm2, %v265_v21  ;;  %301 = vst.msk [vmem:[%s145_s28 + $0x30] sm:$0xff] %vm294_vm2, %v285_v22 }
  0xed PF: > { %s12_s9 = sadd.s32 1, %s442_s9  }
  0xee   : > { %p9_p4 = scmp.ge.s32.totalorder %s12_s9, 4  }
  0xf0   :  { %11 = sbr.rel (!%p9_p4) target bundleno = 1 (0x1), region = 58 }

// kernel: large_backbone_forward.9
= control target key start
LH: loop header
LB: loop body
LE: loop exit
PB: predicated region body
PF: predicated region fallthrough
CT: control target
= control target key end

     0   :  { %s343_s9 = smov 0   ;;  %s357_s0 = inlined_call_operand.vmem [shape: f32[32,8], index: 0, kind: input, shape index: {}]   ;;  %s358_s1 = inlined_call_operand.vmem [shape: f32[8,24], index: 1, kind: input, shape index: {}]   ;;  %s359_s2 = inlined_call_operand.vmem [shape: f32[32,24], index: 2, kind: output, shape index: {}]  }
   0x1 LB: > { %s291_s10 = sadd.s32 4294967295, %s326_s9   ;;  %p295_p0 = scmp.ge.s32.totalorder %s326_s9, 1  ;;  %s326_s9 = sphi %s343_s9, %s12_s9  }
   0x2   : > { %p113_p1 = scmp.lt.s32.totalorder %s326_s9, 3 }
   0x4   : > { %p114_p2 = pnand %p295_p0, %p113_p1 }
   0x5   : > { %v149_v0 = vld [vmem:[%s358_s1] sm:$0xff] (!%p114_p2)  ;;  %s296_s13 = sshll.u32 (!%p114_p2), %s291_s10, 1  ;;  %vm150_vm0 = vcmask (!%p114_p2), 64512   ;;  %vm232_vm1 = vcmask (!%p114_p2), 195584  }
   0x6   : > { %117 = sbr.rel (%p114_p2) target bundleno = 232 (0xe8), region = 28  ;;  %307 = vmatprep.subr.mxu0 (!%p114_p2), %v149_v0  ;;  %p136_p3 = scmp.lt.s32.totalorder (!%p114_p2), %s296_s13, 3 }
   0x7   : > { %308 = vmatpush3.msra.mxu0 (!%p114_p2), %v149_v0 }
   0xd   : > { %s361_s13 = smov (!%p136_p3, %s296_s13), 3 }
   0xe   : > { %s297_s14 = sshll.u32 %s361_s13, 3 }
   0xf   : > { %s139_s17 = scalar_lea.vmem %s357_s0, %s297_s14  ;;  %s145_s20 = scalar_lea.vmem %s359_s2, %s297_s14 }
  0x10   : > { %v147_v1 = vld [vmem:[%s139_s17] sm:$0xff]  ;;  %v148_v2 = vld [vmem:[%s139_s17 + $0x8] sm:$0xff] }
  0x11   : > { %309 = vmatprep.mubr.msk.f32.mxu0 %vm150_vm0, %v147_v1 }
  0x12   : > { %310 = vmatmul.mubr.msk.f32.vlgmr.msra.gmra.mrb[0].mxu0 %vm150_vm0, %v148_v2 }
  0xe5   : > { %v311_v3 = vpop.f32.mrb[0].mxu0 }
  0xe6   : > { %v223_v4 = vpop.f32.mrb[1].mxu0  ;;  %234 = vst.msk [vmem:[%s145_s20 + $0x8] sm:$0xff] %vm232_vm1, %v311_v3 }
  0xe7   : > { %233 = vst.msk [vmem:[%s145_s20] sm:$0xff] %vm232_vm1, %v223_v4 }
  0xe8 PF: > { %s12_s9 = sadd.s32 1, %s326_s9  }
  0xe9   : > { %p9_p4 = scmp.ge.s32.totalorder %s12_s9, 4  }
  0xeb   :  { %11 = sbr.rel (!%p9_p4) target bundleno = 1 (0x1), region = 58 }

// kernel: large_backbone_forward.10
= control target key start
LH: loop header
LB: loop body
LE: loop exit
PB: predicated region body
PF: predicated region fallthrough
CT: control target
= control target key end

     0   :  { %s391_s9 = smov 0   ;;  %s437_s0 = inlined_call_operand.vmem [shape: f32[32,72], index: 0, kind: input, shape index: {}]   ;;  %s438_s1 = inlined_call_operand.vmem [shape: f32[72,8], index: 1, kind: input, shape index: {}]   ;;  %s439_s2 = inlined_call_operand.vmem [shape: f32[32,8], index: 2, kind: output, shape index: {}]  }
   0x1 LB: > { %s299_s10 = sadd.s32 4294967295, %s374_s9   ;;  %p303_p0 = scmp.ge.s32.totalorder %s374_s9, 1  ;;  %s374_s9 = sphi %s391_s9, %s12_s9  }
   0x2   : > { %p113_p1 = scmp.lt.s32.totalorder %s374_s9, 3 }
   0x4   : > { %p114_p2 = pnand %p303_p0, %p113_p1 }
   0x5   : > { %v149_v0 = vld [vmem:[%s438_s1] sm:$0xff] (!%p114_p2)  ;;  %v150_v1 = vld [vmem:[%s438_s1 + $0x8] sm:$0xff] (!%p114_p2)  ;;  %v151_v2 = vld [vmem:[%s438_s1 + $0x10] sm:$0xff] (!%p114_p2)  ;;  %s304_s17 = sshll.u32 (!%p114_p2), %s299_s10, 1  ;;  %vm158_vm0 = vcmask (!%p114_p2), 588800   ;;  %vm240_vm1 = vcmask (!%p114_p2), 64512  }
   0x6   : > { %117 = sbr.rel (%p114_p2) target bundleno = 240 (0xf0), region = 28  ;;  %v344_v3 = vpack.c.bf16 (!%p114_p2), %v150_v1, %v149_v0  ;;  %v152_v4 = vld [vmem:[%s438_s1 + $0x18] sm:$0xff] (!%p114_p2)  ;;  %p136_p3 = scmp.lt.s32.totalorder (!%p114_p2), %s304_s17, 3  ;;  %v153_v6 = vld [vmem:[%s438_s1 + $0x20] sm:$0xff] (!%p114_p2)  ;;  %v154_v7 = vld [vmem:[%s438_s1 + $0x28] sm:$0xff] (!%p114_p2) }
   0x7   : > { %v348_v5 = vpack.c.bf16 (!%p114_p2), %v152_v4, %v151_v2  ;;  %v352_v8 = vpack.c.bf16 (!%p114_p2), %v154_v7, %v153_v6  ;;  %v155_v9 = vld [vmem:[%s438_s1 + $0x30] sm:$0xff] (!%p114_p2)  ;;  %v156_v10 = vld [vmem:[%s438_s1 + $0x38] sm:$0xff] (!%p114_p2)  ;;  %v157_v13 = vld [vmem:[%s438_s1 + $0x40] sm:$0xff] (!%p114_p2) }
   0x8   : > { %345 = vmatprep.subr.bf16.mxu0 (!%p114_p2), %v344_v3  ;;  %v356_v12 = vpack.c.bf16 (!%p114_p2), %v156_v10, %v155_v9 }
   0x9   : > { %347 = vmatpush3.bf16.msra.mxu0 (!%p114_p2), %v344_v3 }
   0xa   : > { %349 = vmatprep.subr.bf16.mxu0 (!%p114_p2), %v348_v5 }
   0xd   : > { %s441_s17 = smov (!%p136_p3, %s304_s17), 3  ;;  %351 = vmatpush3.bf16.msra.mxu0 %v348_v5 }
   0xe   : > { %s305_s24 = sshll.u32 %s441_s17, 3  ;;  %353 = vmatprep.subr.bf16.mxu0 %v352_v8 }
   0xf   : > { %s139_s3 = scalar_lea.vmem %s437_s0, %s305_s24  ;;  %s145_s8 = scalar_lea.vmem %s439_s2, %s305_s24 }
  0x10   : > { %v147_v11 = vld [vmem:[%s139_s3] sm:$0xff]  ;;  %v148_v14 = vld [vmem:[%s139_s3 + $0x8] sm:$0xff] }
  0x11   : > { %341 = vmatprep.mubr.msk.f32.mxu0 %vm158_vm0, %v147_v11  ;;  %355 = vmatpush3.bf16.msra.mxu0 %v352_v8 }
  0x12   : > { %357 = vmatprep.subr.bf16.mxu0 %v356_v12 }
  0x15   : > { %359 = vmatpush3.bf16.msra.mxu0 %v356_v12 }
  0x16   : > { %339 = vmatprep.subr.mxu0 %v157_v13 }
  0x19   : > { %340 = vmatpush3.msra.mxu0 %v157_v13 }
  0x1a   : > { %342 = vmatmul.mubr.msk.f32.vlgmr.msra.gmra.mrb[0].mxu0 %vm158_vm0, %v148_v14 }
  0xed   : > { %v343_v15 = vpop.f32.mrb[0].mxu0 }
  0xee   : > { %v231_v16 = vpop.f32.mrb[1].mxu0  ;;  %242 = vst.msk [vmem:[%s145_s8 + $0x8] sm:$0xff] %vm240_vm1, %v343_v15 }
  0xef   : > { %241 = vst.msk [vmem:[%s145_s8] sm:$0xff] %vm240_vm1, %v231_v16 }
  0xf0 PF: > { %s12_s9 = sadd.s32 1, %s374_s9  }
  0xf1   : > { %p9_p4 = scmp.ge.s32.totalorder %s12_s9, 4  }
  0xf3   :  { %11 = sbr.rel (!%p9_p4) target bundleno = 1 (0x1), region = 58 }

// kernel: large_backbone_forward.11
= control target key start
LH: loop header
LB: loop body
LE: loop exit
PB: predicated region body
PF: predicated region fallthrough
CT: control target
= control target key end

     0   :  { %s415_s12 = smov 0   ;;  %s438_s0 = inlined_call_operand.vmem [shape: f32[32,8], index: 0, kind: input, shape index: {}]   ;;  %s439_s1 = inlined_call_operand.vmem [shape: f32[8,16], index: 1, kind: input, shape index: {}]   ;;  %s440_s2 = inlined_call_operand.vmem [shape: f32[32,16], index: 2, kind: input, shape index: {}]   ;;  %s441_s3 = inlined_call_operand.vmem [shape: f32[32,16], index: 3, kind: output, shape index: {}]  }
   0x1 LB: > { %s356_s13 = sadd.s32 4294967295, %s393_s12   ;;  %p360_p0 = scmp.ge.s32.totalorder %s393_s12, 1  ;;  %s393_s12 = sphi %s415_s12, %s13_s12  }
   0x2   : > { %p149_p1 = scmp.lt.s32.totalorder %s393_s12, 3 }
   0x4   : > { %p150_p2 = pnand %p360_p0, %p149_p1 }
   0x5   : > { %v198_v0 = vld [vmem:[%s439_s1] sm:$0xff] (!%p150_p2)  ;;  %s361_s16 = sshll.u32 (!%p150_p2), %s356_s13, 1  ;;  %vm201_vm0 = vcmask (!%p150_p2), 64512   ;;  %vm285_vm1 = vcmask (!%p150_p2), 130048  }
   0x6   : > { %153 = sbr.rel (%p150_p2) target bundleno = 236 (0xec), region = 32  ;;  %374 = vmatprep.subr.mxu0 (!%p150_p2), %v198_v0  ;;  %p179_p3 = scmp.lt.s32.totalorder (!%p150_p2), %s361_s16, 3 }
   0x7   : > { %375 = vmatpush3.msra.mxu0 (!%p150_p2), %v198_v0 }
   0xd   : > { %s443_s16 = smov (!%p179_p3, %s361_s16), 3 }
   0xe   : > { %s362_s17 = sshll.u32 %s443_s16, 3 }
   0xf   : > { %s182_s20 = scalar_lea.vmem %s438_s0, %s362_s17  ;;  %s188_s23 = scalar_lea.vmem %s440_s2, %s362_s17 }
  0x10   : > { %v196_v1 = vld [vmem:[%s182_s20] sm:$0xff]  ;;  %v197_v2 = vld [vmem:[%s182_s20 + $0x8] sm:$0xff]  ;;  %s194_s26 = scalar_lea.vmem %s441_s3, %s362_s17 }
  0x11   : > { %376 = vmatprep.mubr.msk.f32.mxu0 %vm201_vm0, %v196_v1  ;;  %v200_v3 = vld [vmem:[%s188_s23 + $0x8] sm:$0xff]  ;;  %v199_v4 = vld [vmem:[%s188_s23] sm:$0xff] }
  0x12   : > { %377 = vmatmul.mubr.msk.f32.vlgmr.msra.gmra.mrb[0].mxu0 %vm201_vm0, %v197_v2 }
  0xe5   : > { %v378_v5 = vpop.f32.mrb[0].mxu0 }
  0xe6   : > { %v280_v6 = vadd.f32 %v378_v5, %v200_v3  ;;  %v274_v7 = vpop.f32.mrb[1].mxu0 }
  0xe7   : > { %v275_v8 = vadd.f32 %v274_v7, %v199_v4 }
  0xe8   : > { %v284_v10 = vmax.f32 %v280_v6, 0.0 }
  0xe9   : > { %v283_v9 = vmax.f32 %v275_v8, 0.0 }
  0xea   : > { %287 = vst.msk [vmem:[%s194_s26 + $0x8] sm:$0xff] %vm285_vm1, %v284_v10 }
  0xeb   : > { %286 = vst.msk [vmem:[%s194_s26] sm:$0xff] %vm285_vm1, %v283_v9 }
  0xec PF: > { %s13_s12 = sadd.s32 1, %s393_s12  }
  0xed   : > { %p10_p4 = scmp.ge.s32.totalorder %s13_s12, 4  }
  0xef   :  { %12 = sbr.rel (!%p10_p4) target bundleno = 1 (0x1), region = 65 }

// kernel: large_backbone_forward.12
= control target key start
LH: loop header
LB: loop body
LE: loop exit
PB: predicated region body
PF: predicated region fallthrough
CT: control target
= control target key end

     0   :  { %s351_s9 = smov 0   ;;  %s374_s0 = inlined_call_operand.vmem [shape: f32[32,16], index: 0, kind: input, shape index: {}]   ;;  %s375_s1 = inlined_call_operand.vmem [shape: f32[16,48], index: 1, kind: input, shape index: {}]   ;;  %s376_s2 = inlined_call_operand.vmem [shape: f32[32,48], index: 2, kind: output, shape index: {}]  }
   0x1 LB: > { %s292_s10 = sadd.s32 4294967295, %s334_s9   ;;  %p296_p0 = scmp.ge.s32.totalorder %s334_s9, 1  ;;  %s334_s9 = sphi %s351_s9, %s12_s9  }
   0x2   : > { %p113_p1 = scmp.lt.s32.totalorder %s334_s9, 3 }
   0x4   : > { %p114_p2 = pnand %p296_p0, %p113_p1 }
   0x5   : > { %v149_v0 = vld [vmem:[%s375_s1] sm:$0xff] (!%p114_p2)  ;;  %v150_v1 = vld [vmem:[%s375_s1 + $0x8] sm:$0xff] (!%p114_p2)  ;;  %s297_s15 = sshll.u32 (!%p114_p2), %s292_s10, 1  ;;  %vm151_vm0 = vcmask (!%p114_p2), 130048   ;;  %vm233_vm1 = vcmask (!%p114_p2), 392192  }
   0x6   : > { %117 = sbr.rel (%p114_p2) target bundleno = 232 (0xe8), region = 28  ;;  %v316_v2 = vpack.c.bf16 (!%p114_p2), %v150_v1, %v149_v0  ;;  %p136_p3 = scmp.lt.s32.totalorder (!%p114_p2), %s297_s15, 3 }
   0x8   : > { %317 = vmatprep.subr.bf16.mxu0 (!%p114_p2), %v316_v2 }
   0x9   : > { %319 = vmatpush3.bf16.msra.mxu0 (!%p114_p2), %v316_v2 }
   0xd   : > { %s378_s15 = smov (!%p136_p3, %s297_s15), 3 }
   0xe   : > { %s298_s16 = sshll.u32 %s378_s15, 3 }
   0xf   : > { %s139_s19 = scalar_lea.vmem %s374_s0, %s298_s16  ;;  %s145_s22 = scalar_lea.vmem %s376_s2, %s298_s16 }
  0x10   : > { %v147_v3 = vld [vmem:[%s139_s19] sm:$0xff]  ;;  %v148_v4 = vld [vmem:[%s139_s19 + $0x8] sm:$0xff] }
  0x11   : > { %313 = vmatprep.mubr.msk.f32.mxu0 %vm151_vm0, %v147_v3 }
  0x12   : > { %314 = vmatmul.mubr.msk.f32.vlgmr.msra.gmra.mrb[0].mxu0 %vm151_vm0, %v148_v4 }
  0xe5   : > { %v315_v5 = vpop.f32.mrb[0].mxu0 }
  0xe6   : > { %v224_v6 = vpop.f32.mrb[1].mxu0  ;;  %235 = vst.msk [vmem:[%s145_s22 + $0x8] sm:$0xff] %vm233_vm1, %v315_v5 }
  0xe7   : > { %234 = vst.msk [vmem:[%s145_s22] sm:$0xff] %vm233_vm1, %v224_v6 }
  0xe8 PF: > { %s12_s9 = sadd.s32 1, %s334_s9  }
  0xe9   : > { %p9_p4 = scmp.ge.s32.totalorder %s12_s9, 4  }
  0xeb   :  { %11 = sbr.rel (!%p9_p4) target bundleno = 1 (0x1), region = 58 }

// kernel: large_backbone_forward.13
= control target key start
LH: loop header
LB: loop body
LE: loop exit
PB: predicated region body
PF: predicated region fallthrough
CT: control target
= control target key end

     0   :  { %s405_s9 = smov 0   ;;  %s508_s0 = inlined_call_operand.vmem [shape: f32[32,144], index: 0, kind: input, shape index: {}]   ;;  %s509_s1 = inlined_call_operand.vmem [shape: f32[144,16], index: 1, kind: input, shape index: {}]   ;;  %s510_s2 = inlined_call_operand.vmem [shape: f32[32,16], index: 2, kind: output, shape index: {}]  }
   0x1 LB: > { %s312_s10 = sadd.s32 4294967295, %s387_s9   ;;  %p316_p0 = scmp.ge.s32.totalorder %s387_s9, 1  ;;  %s387_s9 = sphi %s405_s9, %s12_s9  }
   0x2   : > { %p114_p1 = scmp.lt.s32.totalorder %s387_s9, 3 }
   0x4   : > { %p115_p2 = pnand %p316_p0, %p114_p1 }
   0x5   : > { %v154_v0 = vld [vmem:[%s509_s1] sm:$0xff] (!%p115_p2)  ;;  %v155_v1 = vld [vmem:[%s509_s1 + $0x8] sm:$0xff] (!%p115_p2)  ;;  %v156_v2 = vld [vmem:[%s509_s1 + $0x10] sm:$0xff] (!%p115_p2)  ;;  %s317_s17 = sshll.u32 (!%p115_p2), %s312_s10, 1  ;;  %v389_v3 = vmov (!%p115_p2), 0.0|0.0   ;;  %vm172_vm0 = vcmask (!%p115_p2), 130048  }
   0x6   : > { %118 = sbr.rel (%p115_p2) target bundleno = 256 (0x100), region = 28  ;;  %327 = vmatprep.subr.bf16.mxu0 (!%p115_p2), %v389_v3  ;;  %354 = vmatprep.subr.bf16.mxu1 (!%p115_p2), %v389_v3  ;;  %v328_v4 = vpack.c.bf16 (!%p115_p2), %v155_v1, %v154_v0  ;;  %v157_v5 = vld [vmem:[%s509_s1 + $0x18] sm:$0xff] (!%p115_p2)  ;;  %p138_p3 = scmp.lt.s32.totalorder (!%p115_p2), %s317_s17, 3  ;;  %v158_v7 = vld [vmem:[%s509_s1 + $0x20] sm:$0xff] (!%p115_p2)  ;;  %v159_v8 = vld [vmem:[%s509_s1 + $0x28] sm:$0xff] (!%p115_p2) }
   0x7   : > { %v331_v6 = vpack.c.bf16 (!%p115_p2), %v157_v5, %v156_v2  ;;  %v334_v9 = vpack.c.bf16 (!%p115_p2), %v159_v8, %v158_v7  ;;  %v160_v12 = vld [vmem:[%s509_s1 + $0x30] sm:$0xff] (!%p115_p2)  ;;  %v161_v13 = vld [vmem:[%s509_s1 + $0x38] sm:$0xff] (!%p115_p2)  ;;  %v162_v15 = vld [vmem:[%s509_s1 + $0x40] sm:$0xff] (!%p115_p2) }
   0x8   : > { %329 = vmatpush1.bf16.msra.mxu0 (!%p115_p2), %v328_v4  ;;  %363 = vmatpush1.bf16.msra.mxu1 (!%p115_p2), %v328_v4  ;;  %v337_v14 = vpack.c.bf16 (!%p115_p2), %v161_v13, %v160_v12  ;;  %v163_v16 = vld [vmem:[%s509_s1 + $0x48] sm:$0xff] (!%p115_p2)  ;;  %v164_v18 = vld [vmem:[%s509_s1 + $0x50] sm:$0xff] (!%p115_p2)  ;;  %v165_v19 = vld [vmem:[%s509_s1 + $0x58] sm:$0xff] (!%p115_p2) }
   0x9   : > { %330 = vmatprep.subr.bf16.mxu0 (!%p115_p2), %v389_v3  ;;  %355 = vmatprep.subr.bf16.mxu1 (!%p115_p2), %v389_v3  ;;  %v340_v17 = vpack.c.bf16 (!%p115_p2), %v163_v16, %v162_v15  ;;  %v343_v20 = vpack.c.bf16 (!%p115_p2), %v165_v19, %v164_v18  ;;  %v166_v21 = vld [vmem:[%s509_s1 + $0x60] sm:$0xff] (!%p115_p2)  ;;  %v167_v22 = vld [vmem:[%s509_s1 + $0x68] sm:$0xff] (!%p115_p2)  ;;  %v168_v24 = vld [vmem:[%s509_s1 + $0x70] sm:$0xff] (!%p115_p2) }
   0xa   : > { %v346_v23 = vpack.c.bf16 (!%p115_p2), %v167_v22, %v166_v21  ;;  %v169_v25 = vld [vmem:[%s509_s1 + $0x78] sm:$0xff] (!%p115_p2)  ;;  %v170_v27 = vld [vmem:[%s509_s1 + $0x80] sm:$0xff] (!%p115_p2)  ;;  %v171_v28 = vld [vmem:[%s509_s1 + $0x88] sm:$0xff] (!%p115_p2) }
   0xb   : > { %v349_v26 = vpack.c.bf16 (!%p115_p2), %v169_v25, %v168_v24  ;;  %v352_v29 = vpack.c.bf16 (!%p115_p2), %v171_v28, %v170_v27 }
   0xc   : > { %332 = vmatpush1.bf16.msra.mxu0 (!%p115_p2), %v331_v6  ;;  %364 = vmatpush1.bf16.msra.mxu1 (!%p115_p2), %v331_v6 }
   0xd   : > { %s512_s17 = smov (!%p138_p3, %s317_s17), 3  ;;  %333 = vmatprep.subr.bf16.mxu0 %v389_v3  ;;  %356 = vmatprep.subr.bf16.mxu1 %v389_v3 }
   0xe   : > { %s326_s24 = sshll.u32 %s512_s17, 4  ;;  %s321_s26 = sshll.u32 %s512_s17, 3 }
   0xf   : > { %s441_s27 = scalar_lea.vmem %s508_s0, %s326_s24  ;;  %s148_s30 = scalar_lea.vmem %s510_s2, %s321_s26 }
  0x10   : > { %v151_v10 = vld [vmem:[%s441_s27 + $0x8] sm:$0xff]  ;;  %v153_v11 = vld [vmem:[%s441_s27 + $0x18] sm:$0xff]  ;;  %335 = vmatpush1.bf16.msra.mxu0 %v334_v9  ;;  %365 = vmatpush1.bf16.msra.mxu1 %v334_v9  ;;  %v150_v30 = vld [vmem:[%s441_s27] sm:$0xff] }
  0x11   : > { %322 = vmatprep.mubr.msk.f32.mxu0 %vm172_vm0, %v151_v10  ;;  %323 = vmatprep.mubr.msk.f32.mxu1 %vm172_vm0, %v153_v11  ;;  %v152_v31 = vld [vmem:[%s441_s27 + $0x10] sm:$0xff] }
  0x12   : > { %336 = vmatprep.subr.bf16.mxu0 %v389_v3  ;;  %357 = vmatprep.subr.bf16.mxu1 %v389_v3 }
  0x14   : > { %338 = vmatpush1.bf16.msra.mxu0 %v337_v14  ;;  %366 = vmatpush1.bf16.msra.mxu1 %v337_v14 }
  0x15   : > { %339 = vmatprep.subr.bf16.mxu0 %v389_v3  ;;  %358 = vmatprep.subr.bf16.mxu1 %v389_v3 }
  0x18   : > { %341 = vmatpush1.bf16.msra.mxu0 %v340_v17  ;;  %367 = vmatpush1.bf16.msra.mxu1 %v340_v17 }
  0x19   : > { %342 = vmatprep.subr.bf16.mxu0 %v389_v3  ;;  %359 = vmatprep.subr.bf16.mxu1 %v389_v3 }
  0x1c   : > { %344 = vmatpush1.bf16.msra.mxu0 %v343_v20  ;;  %368 = vmatpush1.bf16.msra.mxu1 %v343_v20 }
  0x1d   : > { %345 = vmatprep.subr.bf16.mxu0 %v389_v3  ;;  %360 = vmatprep.subr.bf16.mxu1 %v389_v3 }
  0x20   : > { %347 = vmatpush1.bf16.msra.mxu0 %v346_v23  ;;  %369 = vmatpush1.bf16.msra.mxu1 %v346_v23 }
  0x21   : > { %348 = vmatprep.subr.bf16.mxu0 %v389_v3  ;;  %361 = vmatprep.subr.bf16.mxu1 %v389_v3 }
  0x24   : > { %350 = vmatpush1.bf16.msra.mxu0 %v349_v26  ;;  %370 = vmatpush1.bf16.msra.mxu1 %v349_v26 }
  0x25   : > { %351 = vmatprep.subr.bf16.mxu0 %v389_v3  ;;  %362 = vmatprep.subr.bf16.mxu1 %v389_v3 }
  0x28   : > { %353 = vmatpush1.bf16.msra.mxu0 %v352_v29  ;;  %371 = vmatpush1.bf16.msra.mxu1 %v352_v29 }
  0x2b   : > { %244 = vmatmul.mubr.f32.vlgmr.msra.gmra.mrb[0].mxu0 %v150_v30  ;;  %249 = vmatmul.mubr.f32.vlgmr.msra.gmra.mrb[0].mxu1 %v152_v31 }
  0xfe   : > { %v245_v32 = vpop.f32.mrb[0].mxu0  ;;  %v250_v33 = vpop.f32.mrb[0].mxu1 }
  0xff   : > { %254 = vst.msk [vmem:[%s148_s30] sm:$0xff] %vm172_vm0, %v245_v32  ;;  %v247_v34 = vpop.f32.mrb[1].mxu0  ;;  %v252_v35 = vpop.f32.mrb[1].mxu1  ;;  %255 = vst.msk [vmem:[%s148_s30 + $0x8] sm:$0xff] %vm172_vm0, %v250_v33 }
 0x100 PF: > { %s12_s9 = sadd.s32 1, %s387_s9  }
 0x101   : > { %p9_p4 = scmp.ge.s32.totalorder %s12_s9, 4  }
 0x103   :  { %11 = sbr.rel (!%p9_p4) target bundleno = 1 (0x1), region = 58 }

// kernel: large_backbone_forward.14
= control target key start
LH: loop header
LB: loop body
LE: loop exit
PB: predicated region body
PF: predicated region fallthrough
CT: control target
= control target key end

     0   :  { %s423_s12 = smov 0   ;;  %s449_s0 = inlined_call_operand.vmem [shape: f32[32,16], index: 0, kind: input, shape index: {}]   ;;  %s450_s1 = inlined_call_operand.vmem [shape: f32[16,32], index: 1, kind: input, shape index: {}]   ;;  %s451_s2 = inlined_call_operand.vmem [shape: f32[32,32], index: 2, kind: input, shape index: {}]   ;;  %s452_s3 = inlined_call_operand.vmem [shape: f32[32,32], index: 3, kind: output, shape index: {}]  }
   0x1 LB: > { %s357_s13 = sadd.s32 4294967295, %s401_s12   ;;  %p361_p0 = scmp.ge.s32.totalorder %s401_s12, 1  ;;  %s401_s12 = sphi %s423_s12, %s13_s12  }
   0x2   : > { %p149_p1 = scmp.lt.s32.totalorder %s401_s12, 3 }
   0x4   : > { %p150_p2 = pnand %p361_p0, %p149_p1 }
   0x5   : > { %v198_v0 = vld [vmem:[%s450_s1] sm:$0xff] (!%p150_p2)  ;;  %v199_v1 = vld [vmem:[%s450_s1 + $0x8] sm:$0xff] (!%p150_p2)  ;;  %s362_s18 = sshll.u32 (!%p150_p2), %s357_s13, 1  ;;  %vm202_vm0 = vcmask (!%p150_p2), 130048   ;;  %vm286_vm1 = vcmask (!%p150_p2), 261120  }
   0x6   : > { %153 = sbr.rel (%p150_p2) target bundleno = 236 (0xec), region = 32  ;;  %v383_v2 = vpack.c.bf16 (!%p150_p2), %v199_v1, %v198_v0  ;;  %p179_p3 = scmp.lt.s32.totalorder (!%p150_p2), %s362_s18, 3 }
   0x8   : > { %384 = vmatprep.subr.bf16.mxu0 (!%p150_p2), %v383_v2 }
   0x9   : > { %386 = vmatpush3.bf16.msra.mxu0 (!%p150_p2), %v383_v2 }
   0xd   : > { %s454_s18 = smov (!%p179_p3, %s362_s18), 3 }
   0xe   : > { %s363_s19 = sshll.u32 %s454_s18, 3 }
   0xf   : > { %s182_s22 = scalar_lea.vmem %s449_s0, %s363_s19  ;;  %s188_s25 = scalar_lea.vmem %s451_s2, %s363_s19 }
  0x10   : > { %v196_v3 = vld [vmem:[%s182_s22] sm:$0xff]  ;;  %v197_v4 = vld [vmem:[%s182_s22 + $0x8] sm:$0xff]  ;;  %s194_s28 = scalar_lea.vmem %s452_s3, %s363_s19 }
  0x11   : > { %380 = vmatprep.mubr.msk.f32.mxu0 %vm202_vm0, %v196_v3  ;;  %v201_v5 = vld [vmem:[%s188_s25 + $0x8] sm:$0xff]  ;;  %v200_v6 = vld [vmem:[%s188_s25] sm:$0xff] }
  0x12   : > { %381 = vmatmul.mubr.msk.f32.vlgmr.msra.gmra.mrb[0].mxu0 %vm202_vm0, %v197_v4 }
  0xe5   : > { %v382_v7 = vpop.f32.mrb[0].mxu0 }
  0xe6   : > { %v281_v8 = vadd.f32 %v382_v7, %v201_v5  ;;  %v275_v9 = vpop.f32.mrb[1].mxu0 }
  0xe7   : > { %v276_v10 = vadd.f32 %v275_v9, %v200_v6 }
  0xe8   : > { %v285_v12 = vmax.f32 %v281_v8, 0.0 }
  0xe9   : > { %v284_v11 = vmax.f32 %v276_v10, 0.0 }
  0xea   : > { %288 = vst.msk [vmem:[%s194_s28 + $0x8] sm:$0xff] %vm286_vm1, %v285_v12 }
  0xeb   : > { %287 = vst.msk [vmem:[%s194_s28] sm:$0xff] %vm286_vm1, %v284_v11 }
  0xec PF: > { %s13_s12 = sadd.s32 1, %s401_s12  }
  0xed   : > { %p10_p4 = scmp.ge.s32.totalorder %s13_s12, 4  }
  0xef   :  { %12 = sbr.rel (!%p10_p4) target bundleno = 1 (0x1), region = 65 }

// kernel: large_backbone_forward.15
= control target key start
LH: loop header
LB: loop body
LE: loop exit
PB: predicated region body
PF: predicated region fallthrough
CT: control target
= control target key end

     0   :  { %9 = vsyncpa [#allocation3], 0  ;;  %s679_s0 = inlined_call_operand.vmem [shape: f32[32,32], index: 0, kind: input, shape index: {}]   ;;  %s680_s1 = inlined_call_operand.vmem [shape: f32[32,16], index: 1, kind: input, shape index: {}]   ;;  %s681_s2 = inlined_call_operand.vmem [shape: f32[1,16], index: 2, kind: input, shape index: {}]   ;;  %s682_s3 = inlined_call_operand.vmem [shape: f32[1,16], index: 3, kind: input, shape index: {}]   ;;  %s683_s4 = inlined_call_operand.hbm [shape: f32[32,16], index: 4, kind: output, shape index: {}]  }
   0x1   :  { %11 = vsyncpa [#allocation3 + $0x1], 0  ;;  %s559_s15 = smov 0   ;;  %s561_s16 = smov 0  }
   0x2   :  { %s563_s17 = smov 0   ;;  %s565_s18 = smov 0  }
   0x3 LB: > { %s580_s19 = sadd.s32 4294967295, %s529_s18   ;;  %s384_s20 = sadd.s32 4294967294, %s529_s18   ;;  %s529_s18 = sphi %s565_s18, %s689_s18   ;;  %s525_s17 = sphi %s563_s17, %s688_s17   ;;  %s521_s16 = sphi %s561_s16, %s687_s16   ;;  %s517_s15 = sphi %s559_s15, %s686_s15  }
   0x4   : > { %s584_s21 = sadd.s32 1, %s529_s18   ;;  %s113_s22 = sadd.s32 1, %s525_s17 }
   0x5   : > { %s110_s23 = ssub.s32 %s529_s18, %s584_s21  ;;  %p123_p0 = scmp.ne.s32.totalorder %s525_s17, %s521_s16 }
   0x6   : > { %p111_p1 = scmp.eq.s32.totalorder %s110_s23, 0  ;;  %p124_p2 = scmp.eq.s32.totalorder %s580_s19, 1 }
   0x7   : > { %p129_p3 = scmp.ne.s32.totalorder %s521_s16, %s517_s15  ;;  %p130_p4 = scmp.eq.s32.totalorder %s384_s20, 1 }
   0x8   : > { %s595_s24 = scalar_select %p111_p1, %s525_s17, %s113_s22  }
   0x9   : > { %p597_p5 = por %p124_p2, %p123_p0  ;;  %p601_p6 = por %p130_p4, %p129_p3 }
   0xa   : > { %p387_p7 = scmp.ge.s32.totalorder %s529_s18, 1  ;;  %p166_p8 = scmp.lt.s32.totalorder %s529_s18, 3 }
   0xc   : > { %p167_p9 = pnand %p387_p7, %p166_p8 }
   0xd   : > { %v201_v0 = vld [vmem:[%s680_s1] sm:$0xff] (!%p167_p9)  ;;  %v202_v1 = vld [vmem:[%s680_s1 + $0x8] sm:$0xff] (!%p167_p9)  ;;  %v203_v2 = vld [vmem:[%s680_s1 + $0x10] sm:$0xff] (!%p167_p9)  ;;  %s389_s7 = sshll.u32 (!%p167_p9), %s580_s19, 1  ;;  %vm205_vm0 = vcmask (!%p167_p9), 261120   ;;  %s189_s14 = sand.u32 (!%p167_p9), 1, %s521_s16  }
   0xe   : > { %170 = sbr.rel (%p167_p9) target bundleno = 258 (0x102), region = 36  ;;  %v418_v3 = vpack.c.bf16 (!%p167_p9), %v202_v1, %v201_v0  ;;  %v204_v4 = vld [vmem:[%s680_s1 + $0x18] sm:$0xff] (!%p167_p9)  ;;  %p193_p10 = scmp.lt.s32.totalorder (!%p167_p9), %s389_s7, 3  ;;  %v393_v8 = vld [vmem:[%s681_s2] ss:$0 sm:$0xff] (!%p167_p9)  ;;  %vm305_vm1 = vcmask (!%p167_p9), 130048  }
   0xf   : > { %v422_v5 = vpack.c.bf16 (!%p167_p9), %v204_v4, %v203_v2  ;;  %s388_s20 = sshll.u32 (!%p167_p9), %s189_s14, 4  ;;  %v394_v10 = vld [vmem:[%s682_s3] ss:$0 sm:$0xff] (!%p167_p9)  ;;  %s400_s5 = sshll.u32 (!%p167_p9), %s580_s19, 8 }
  0x10   : > { %419 = vmatprep.subr.bf16.mxu0 (!%p167_p9), %v418_v3  ;;  %s191_s29 = scalar_lea.vmem (!%p167_p9), [#allocation2], %s388_s20  ;;  %s634_s8 = scalar_lea.hbm (!%p167_p9), %s683_s4, %s400_s5 }
  0x11   : > { %421 = vmatpush3.bf16.msra.mxu0 (!%p167_p9), %v418_v3  ;;  %s322_s30 = sshll.u32 (!%p167_p9), %s191_s29, 4  ;;  %s638_s9 = scalar_lea.sflag (!%p167_p9), [#allocation3], %s189_s14  ;;  %s636_s30 = int_to_ptr.vmem [resolvable:$true] %s322_s30 }
  0x12   : > { %423 = vmatprep.subr.bf16.mxu0 (!%p167_p9), %v422_v5  ;;  %s467_s19 = scalar_lea.vmem (!%p167_p9), %s636_s30, 256 }
  0x13   : > { %p468_p11 = scmp.ne.s32.totalorder (!%p167_p9), %s636_s30, %s467_s19 }
  0x15   : > { %s691_s7 = smov (!%p193_p10, %s389_s7), 3  ;;  %425 = vmatpush3.bf16.msra.mxu0 %v422_v5  ;;  %p469_p12 = pnand %p468_p11, %p597_p5 }
  0x16   : > { %s390_s10 = sshll.u32 %s691_s7, 3 }
  0x17   : > { %s196_s13 = scalar_lea.vmem %s679_s0, %s390_s10  ;;  %p470_p13 = pneg %p469_p12 }
  0x18   : > { %v199_v6 = vld [vmem:[%s196_s13] sm:$0xff]  ;;  %v200_v7 = vld [vmem:[%s196_s13 + $0x8] sm:$0xff]  ;;  %s531_s10 = smov [#allocation2]  }
  0x19   : > { %415 = vmatprep.mubr.msk.f32.mxu0 %vm205_vm0, %v199_v6  ;;  %s471_s11 = sshll.u32 %s531_s10, 4  ;;  %s472_s11 = int_to_ptr.vmem [resolvable:$false] %s471_s11 }
  0x1a   : > { %416 = vmatmul.mubr.msk.f32.vlgmr.msra.gmra.mrb[0].mxu0 %vm205_vm0, %v200_v7  ;;  %s473_s12 = scalar_lea.vmem %s472_s11, 512  ;;  %p474_p0 = scmp.lt.s32.totalorder %s636_s30, %s472_s11 }
  0x1b   : > { %p475_p1 = scmp.lt.s32.totalorder %s473_s12, %s467_s19 }
  0x1d   : > { %p476_p2 = por %p475_p1, %p474_p0 }
  0x1f   : > { %p477_p3 = pnand %p476_p2, %p470_p13 }
  0xed   : > { %v417_v9 = vpop.f32.mrb[0].mxu0 }
  0xee   : > { %v295_v11 = vmul.f32 %v417_v9, %v393_v8  ;;  %v278_v12 = vpop.f32.mrb[1].mxu0 }
  0xef   : > { %v294_v13 = vmul.f32 %v393_v8, %v278_v12 }
  0xf0   : > { %v304_v14 = vadd.f32 %v394_v10, %v295_v11 }
  0xf1   : > { %v303_v15 = vadd.f32 %v394_v10, %v294_v13 }
  0xf2   : > { %307 = vst.msk [vmem:[%s191_s29 + $0x8] sm:$0xff] %vm305_vm1, %v304_v14 }
  0xf3   : > { %306 = vst.msk [vmem:[%s191_s29] sm:$0xff] %vm305_vm1, %v303_v15 }
  0xf4   : > { %480 = shalt.err (!%p477_p3)
}
  0xf5   : > { %s481_s13 = scalar_lea.hbm %s634_s8, 256  ;;  %s485_s22 = scalar_lea.hbm %s683_s4, 512 }
  0xf6   : > { %p482_p4 = scmp.ne.s32.totalorder %s634_s8, %s481_s13  ;;  %p486_p9 = scmp.lt.u32.totalorder %s634_s8, %s683_s4 }
  0xf7   : > { %p487_p10 = scmp.lt.u32.totalorder %s485_s22, %s481_s13  ;;  %p489_p12 = scmp.lt.u32.totalorder %s481_s13, %s634_s8 }
  0xf8   : > { %p483_p7 = pnand %p482_p4, %p597_p5 }
  0xf9   : > { %p488_p11 = por %p487_p10, %p486_p9 }
  0xfa   : > { %p484_p8 = pneg %p483_p7 }
  0xfb   : > { %p490_p13 = por %p489_p12, %p488_p11 }
  0xfd   : > { %p491_p0 = pnand %p490_p13, %p484_p8 }
  0xff   : > { %494 = shalt.err (!%p491_p0)
}
 0x100   : > { %s532_s28 = smov 128   ;;  %s533_s29 = smov 8  }
 0x101   : > { %426 = dma.vmem_to_hbm [thread:$0]  (%p597_p5), %s636_s30, 256, %s634_s8, %s638_s9, %s532_s28, %s532_s28, %s533_s29  }
 0x102 PF: > { %p432_p1 = scmp.ge.s32.totalorder %s529_s18, 2  ;;  %s337_s5 = sand.u32 1, %s517_s15  }
 0x103   : > { %s338_s6 = scalar_lea.sflag [#allocation3], %s337_s5 }
 0x104   : > { %p429_p2 = pnand %p432_p1, %p601_p6 }
 0x106   : > { %512 = dma.done.wait (!%p429_p2), %s338_s6, 256  }
 0x107   : > { %514 = vsyncadd (!%p429_p2), %s338_s6, 4294967040  ;;  %p14_p3 = scmp.ge.s32.totalorder %s584_s21, 4   ;;  %s686_s15 = smov %s521_s16 }
 0x108   : > { %s687_s16 = smov %s525_s17  ;;  %s688_s17 = smov %s595_s24 }
 0x109   : > { %s689_s18 = smov %s584_s21  ;;  %16 = sbr.rel (!%p14_p3) target bundleno = 3 (0x3), region = 71 }
 0x110   :  { %343 = vsyncpa [#allocation3], 1 }
 0x111   :  { %345 = vsyncpa [#allocation3 + $0x1], 1 }

</bundles_post_ra>
